<compile_context>
chip_gen: v7x
topology: tpu7x:2x2x1
jax: 0.10.0
libtpu: 0.0.40
codegen_flags: <defaults>
</compile_context>

<pallas_src>
import functools

import jax
import jax.numpy as jnp
from jax import lax
from jax.experimental import pallas as pl
from jax.experimental.pallas import tpu as pltpu


def _round_up(v, m):
    return (v + m - 1) // m * m


def _pick_num_groups(B, HW, target_lanes=16384):
    """Largest NG dividing B such that each lane group (of whole images) still
    has >= target_lanes lanes and stays a multiple of 128; NG=1 (full batch
    fusion into one grid step) otherwise."""
    best = 1
    for ng in range(1, B + 1):
        if B % ng:
            continue
        n = (B // ng) * HW
        if n >= target_lanes and n % 128 == 0:
            best = ng
    return best


# ----------------------------------------------------------------------------
# Pallas kernel: one lane group (G whole images fused on the lane axis) per
# grid step; channels on sublanes, batch*spatial on the 128-lane axis.
# ----------------------------------------------------------------------------
def _basic_kernel(x_ref, mrt_ref, mrb_ref, mcl_ref, mcr_ref,
                  a1_ref, w1_ref, b1_ref, a2_ref, w2_ref,
                  wsc_ref, bout_ref, o_ref, *, W, N):

    # Rebuild the 8 off-centre tap masks from 2 row + 2 col (1, N) vectors:
    # cheap (1,N) VPU products instead of a resident (9, N) f32 tensor.
    mrt = mrt_ref[...]
    mrb = mrb_ref[...]
    mcl = mcl_ref[...]
    mcr = mcr_ref[...]
    masks = {
        (0, 0): mrt * mcl, (0, 1): mrt, (0, 2): mrt * mcr,
        (1, 0): mcl,                    (1, 2): mcr,
        (2, 0): mrb * mcl, (2, 1): mrb, (2, 2): mrb * mcr,
    }

    def prelu(v, a_ref):
        # PyTorch PReLU: max(0, x) + alpha * min(0, x); alpha is (C, 1)
        a = a_ref[...]
        return jnp.where(v > 0, v, v * a)

    def conv3x3(h, w_ref):
        # im2col in the flattened (image-contiguous) lane domain: tap (dy, dx)
        # needs h[p + off], off = (dy-1)*W + (dx-1) -> lane roll by -off.
        # Out-of-image lanes (incl. lanes that wrapped across an image
        # boundary because batch is folded into lanes) are zeroed by the
        # per-image border masks == SAME zero padding.
        taps = []
        for dy in range(3):
            for dx in range(3):
                off = (dy - 1) * W + (dx - 1)
                if off == 0:
                    taps.append(h)                                # centre tap
                else:
                    t = pltpu.roll(h, (-off) % N, axis=1)
                    taps.append(t * masks[(dy, dx)])
        # Tap groups are 8-sublane aligned (channels padded wrapper-side), so
        # the concat lands on (8, 128) tile edges -> no relayout traffic.
        slab = jnp.concatenate(taps, axis=0)                      # (9*cin_p, N)
        return jnp.dot(w_ref[...], slab,
                       preferred_element_type=jnp.float32)        # (cout_p, N)

    x = x_ref[...].astype(jnp.float32)                            # (C0p, N)

    # shortcut 1x1 conv first: independent MXU work overlapping tap prep
    sc = jnp.dot(wsc_ref[...], x, preferred_element_type=jnp.float32)

    # main branch: PReLU -> Conv3x3 -> PReLU -> Conv3x3
    h = prelu(x, a1_ref)
    h = conv3x3(h, w1_ref) + b1_ref[...]                          # (C1p, N)
    h = prelu(h, a2_ref)
    h = conv3x3(h, w2_ref)                                        # (C2,  N)

    # bout = conv2 bias + shortcut bias, fused wrapper-side -> one VPU add
    o_ref[...] = (h + sc + bout_ref[...]).astype(o_ref.dtype)     # lane-dense


def basic_forward(x_nchw, params):
    """Pallas forward of Basic('relu-conv-relu-conv', [C0, C1, C2]), C0 != C2."""
    a1, w1, b1, a2, w2, b2, wsc, bsc = params
    B, C0, H, W = x_nchw.shape
    C1 = w1.shape[-1]
    C2 = w2.shape[-1]
    HW = H * W
    C0p = _round_up(C0, 8)
    C1p = _round_up(C1, 8)

    NG = _pick_num_groups(B, HW)       # batch folded into lanes, NG lane groups
    G = B // NG                        # whole images per grid step
    N = G * HW                         # lanes per grid step

    # ---- wrapper-side layout plumbing (tiny, one-off) ----
    # input: NCHW -> (C0p, B*HW): channels on sublanes, batch*spatial on lanes
    x_flat = jnp.transpose(x_nchw.reshape(B, C0, HW), (1, 0, 2)).reshape(C0, B * HW)
    x_flat = jnp.pad(x_flat, ((0, C0p - C0), (0, 0)))

    # conv weights HWIO (3,3,cin,cout) -> (cout_p, 9*cin_p), tap-major, with
    # each tap group zero-padded to an 8-sublane-aligned cin_p
    def im2col_weight(w, cin, cin_p, cout, cout_p):
        w9 = w.reshape(9, cin, cout)
        w9 = jnp.pad(w9, ((0, 0), (0, cin_p - cin), (0, cout_p - cout)))
        return jnp.transpose(w9.reshape(9 * cin_p, cout_p))

    w1t = im2col_weight(w1, C0, C0p, C1, C1p)                     # (C1p, 9*C0p)
    w2t = im2col_weight(w2, C1, C1p, C2, C2)                      # (C2,  9*C1p)
    wsct = jnp.pad(jnp.transpose(wsc), ((0, 0), (0, C0p - C0)))   # (C2, C0p)

    a1c = jnp.pad(a1.reshape(C0, 1), ((0, C0p - C0), (0, 0)))
    b1c = jnp.pad(b1.reshape(C1, 1), ((0, C1p - C1), (0, 0)))
    a2c = jnp.pad(a2.reshape(C1, 1), ((0, C1p - C1), (0, 0)))
    boutc = (b2 + bsc).reshape(C2, 1)          # fused conv2 + shortcut bias

    # decomposed border masks: 2 row + 2 col vectors of shape (1, N) per lane
    # group (tiled per image) instead of a resident (9, HW) f32 plane
    pos = jnp.arange(HW, dtype=jnp.int32)
    yy, xx = pos // W, pos % W

    def tile_mask(m):
        return jnp.tile(m.astype(jnp.float32), (G,)).reshape(1, N)

    mrt = tile_mask(yy >= 1)          # taps with dy == 0 need y-1 >= 0
    mrb = tile_mask(yy <= H - 2)      # taps with dy == 2 need y+1 <  H
    mcl = tile_mask(xx >= 1)          # taps with dx == 0 need x-1 >= 0
    mcr = tile_mask(xx <= W - 2)      # taps with dx == 2 need x+1 <  W

    kernel = functools.partial(_basic_kernel, W=W, N=N)
    rep = lambda g: (0, 0)                                        # resident

    out = pl.pallas_call(
        kernel,
        out_shape=jax.ShapeDtypeStruct((C2, B * HW), x_nchw.dtype),
        grid=(NG,),
        in_specs=[
            pl.BlockSpec((C0p, N), lambda g: (0, g)),             # x (lane-dense)
            pl.BlockSpec((1, N), rep),                            # row-top mask
            pl.BlockSpec((1, N), rep),                            # row-bottom mask
            pl.BlockSpec((1, N), rep),                            # col-left mask
            pl.BlockSpec((1, N), rep),                            # col-right mask
            pl.BlockSpec((C0p, 1), rep),                          # prelu1 alpha
            pl.BlockSpec((C1p, 9 * C0p), rep),                    # conv1 weight (im2col)
            pl.BlockSpec((C1p, 1), rep),                          # conv1 bias
            pl.BlockSpec((C1p, 1), rep),                          # prelu2 alpha
            pl.BlockSpec((C2, 9 * C1p), rep),                     # conv2 weight (im2col)
            pl.BlockSpec((C2, C0p), rep),                         # shortcut weight
            pl.BlockSpec((C2, 1), rep),                           # fused out bias
        ],
        out_specs=pl.BlockSpec((C2, N), lambda g: (0, g)),
        compiler_params=pltpu.CompilerParams(
            dimension_semantics=("parallel",)),
    )(x_flat, mrt, mrb, mcl, mcr, a1c, w1t, b1c, a2c, w2t, wsct, boutc)

    # cheap reshapes/transposes back to NCHW (no large HBM transposes)
    return jnp.transpose(out.reshape(C2, B, HW), (1, 0, 2)).reshape(B, C2, H, W)


# ----------------------------------------------------------------------------
# Pure-JAX reference (for correctness check only)
# ----------------------------------------------------------------------------
def basic_forward_ref(x_nchw, params):
    a1, w1, b1, a2, w2, b2, wsc, bsc = params
    x = jnp.transpose(x_nchw, (0, 2, 3, 1)).astype(jnp.float32)

    def prelu(v, a):
        return jnp.where(v > 0, v, v * a[0])

    def conv(v, w, b):
        y = lax.conv_general_dilated(
            v, w, window_strides=(1, 1), padding="SAME",
            dimension_numbers=("NHWC", "HWIO", "NHWC"),
            precision=lax.Precision.HIGHEST)
        return y + b[0]

    h = prelu(x, a1)
    h = conv(h, w1, b1)
    h = prelu(h, a2)
    h = conv(h, w2, b2)
    sc = conv(x, wsc[None, None], bsc)
    return jnp.transpose(h + sc, (0, 3, 1, 2)).astype(x_nchw.dtype)


# ----------------------------------------------------------------------------
# Deterministic parameter init + run
# ----------------------------------------------------------------------------
def make_params(key, C0, C1, C2):
    k1, k2, k3, k4, k5, k6 = jax.random.split(key, 6)
    a1 = jnp.full((1, C0), 0.25, jnp.float32)                 # PReLU init=0.25
    w1 = 0.1 * jax.random.normal(k1, (3, 3, C0, C1), jnp.float32)
    b1 = 0.1 * jax.random.normal(k2, (1, C1), jnp.float32)
    a2 = jnp.full((1, C1), 0.25, jnp.float32)
    w2 = 0.1 * jax.random.normal(k3, (3, 3, C1, C2), jnp.float32)
    b2 = 0.1 * jax.random.normal(k4, (1, C2), jnp.float32)
    wsc = 0.1 * jax.random.normal(k5, (C0, C2), jnp.float32)  # 1x1 shortcut
    bsc = 0.1 * jax.random.normal(k6, (1, C2), jnp.float32)
    return (a1, w1, b1, a2, w2, b2, wsc, bsc)


if __name__ == "__main__":
    key = jax.random.PRNGKey(0)
    kx, kp = jax.random.split(key)

    B, C0, C1, C2, H, W = 2, 4, 8, 8, 16, 16
    x = jax.random.normal(kx, (B, C0, H, W), jnp.float32)     # NCHW input
    params = make_params(kp, C0, C1, C2)

    out = jax.block_until_ready(basic_forward(x, params))
    ref = jax.block_until_ready(basic_forward_ref(x, params))

    assert out.shape == (B, C2, H, W), out.shape
    err = float(jnp.max(jnp.abs(out - ref)))
    assert jnp.allclose(out, ref, atol=5e-4, rtol=5e-4), err

    print("KERNEL_OK")
</pallas_src>

<mosaic_0001>
module attributes {stable_mosaic.version = 11 : i64} {
  func.func @_basic_kernel(%arg0: i32, %arg1: memref<8x512xf32, #tpu.memory_space<vmem>>, %arg2: memref<1x512xf32, #tpu.memory_space<vmem>>, %arg3: memref<1x512xf32, #tpu.memory_space<vmem>>, %arg4: memref<1x512xf32, #tpu.memory_space<vmem>>, %arg5: memref<1x512xf32, #tpu.memory_space<vmem>>, %arg6: memref<8x1xf32, #tpu.memory_space<vmem>>, %arg7: memref<8x72xf32, #tpu.memory_space<vmem>>, %arg8: memref<8x1xf32, #tpu.memory_space<vmem>>, %arg9: memref<8x1xf32, #tpu.memory_space<vmem>>, %arg10: memref<8x72xf32, #tpu.memory_space<vmem>>, %arg11: memref<8x8xf32, #tpu.memory_space<vmem>>, %arg12: memref<8x1xf32, #tpu.memory_space<vmem>>, %arg13: memref<8x512xf32, #tpu.memory_space<vmem>>) attributes {dimension_semantics = [#tpu.dimension_semantics<parallel>], iteration_bounds = array<i64: 1>, scalar_prefetch = 0 : i64, scratch_operands = 0 : i64, tpu.core_type = #tpu.core_type<tc>, window_params = [{transform_indices = @transform_0, window_bounds = array<i64: 8, 512>}, {pipeline_mode = #tpu.pipeline_mode<synchronous>, transform_indices = @transform_1, window_bounds = array<i64: 1, 512>}, {pipeline_mode = #tpu.pipeline_mode<synchronous>, transform_indices = @transform_2, window_bounds = array<i64: 1, 512>}, {pipeline_mode = #tpu.pipeline_mode<synchronous>, transform_indices = @transform_3, window_bounds = array<i64: 1, 512>}, {pipeline_mode = #tpu.pipeline_mode<synchronous>, transform_indices = @transform_4, window_bounds = array<i64: 1, 512>}, {pipeline_mode = #tpu.pipeline_mode<synchronous>, transform_indices = @transform_5, window_bounds = array<i64: 8, 1>}, {pipeline_mode = #tpu.pipeline_mode<synchronous>, transform_indices = @transform_6, window_bounds = array<i64: 8, 72>}, {pipeline_mode = #tpu.pipeline_mode<synchronous>, transform_indices = @transform_7, window_bounds = array<i64: 8, 1>}, {pipeline_mode = #tpu.pipeline_mode<synchronous>, transform_indices = @transform_8, window_bounds = array<i64: 8, 1>}, {pipeline_mode = #tpu.pipeline_mode<synchronous>, transform_indices = @transform_9, window_bounds = array<i64: 8, 72>}, {pipeline_mode = #tpu.pipeline_mode<synchronous>, transform_indices = @transform_10, window_bounds = array<i64: 8, 8>}, {pipeline_mode = #tpu.pipeline_mode<synchronous>, transform_indices = @transform_11, window_bounds = array<i64: 8, 1>}, {transform_indices = @transform_12, window_bounds = array<i64: 8, 512>}]} {
    %c0 = arith.constant 0 : index
    %c0_0 = arith.constant 0 : index
    %0 = vector.load %arg2[%c0, %c0_0] : memref<1x512xf32, #tpu.memory_space<vmem>>, vector<1x512xf32>
    %c0_1 = arith.constant 0 : index
    %c0_2 = arith.constant 0 : index
    %1 = vector.load %arg3[%c0_1, %c0_2] : memref<1x512xf32, #tpu.memory_space<vmem>>, vector<1x512xf32>
    %c0_3 = arith.constant 0 : index
    %c0_4 = arith.constant 0 : index
    %2 = vector.load %arg4[%c0_3, %c0_4] : memref<1x512xf32, #tpu.memory_space<vmem>>, vector<1x512xf32>
    %c0_5 = arith.constant 0 : index
    %c0_6 = arith.constant 0 : index
    %3 = vector.load %arg5[%c0_5, %c0_6] : memref<1x512xf32, #tpu.memory_space<vmem>>, vector<1x512xf32>
    %4 = arith.mulf %0, %2 : vector<1x512xf32>
    %5 = arith.mulf %0, %3 : vector<1x512xf32>
    %6 = arith.mulf %1, %2 : vector<1x512xf32>
    %7 = arith.mulf %1, %3 : vector<1x512xf32>
    %c0_7 = arith.constant 0 : index
    %c0_8 = arith.constant 0 : index
    %8 = vector.load %arg1[%c0_7, %c0_8] : memref<8x512xf32, #tpu.memory_space<vmem>>, vector<8x512xf32>
    %c0_9 = arith.constant 0 : index
    %c0_10 = arith.constant 0 : index
    %9 = vector.load %arg11[%c0_9, %c0_10] : memref<8x8xf32, #tpu.memory_space<vmem>>, vector<8x8xf32>
    %cst = arith.constant dense<0.000000e+00> : vector<8x512xf32>
    %10 = tpu.matmul %9, %8, %cst {dimension_numbers = #tpu.dot_dimension_numbers<[1], [0], [0], [1], [0, 0, 1, 1], [], []>} : vector<8x8xf32>, vector<8x512xf32>, vector<8x512xf32> -> vector<8x512xf32>
    %c0_11 = arith.constant 0 : index
    %c0_12 = arith.constant 0 : index
    %11 = vector.load %arg6[%c0_11, %c0_12] : memref<8x1xf32, #tpu.memory_space<vmem>>, vector<8x1xf32>
    %cst_13 = arith.constant 0.000000e+00 : f32
    %12 = vector.broadcast %cst_13 : f32 to vector<8x512xf32>
    %13 = arith.cmpf ogt, %8, %12 : vector<8x512xf32>
    %14 = vector.broadcast %11 : vector<8x1xf32> to vector<8x512xf32>
    %15 = arith.mulf %8, %14 : vector<8x512xf32>
    %16 = arith.select %13, %8, %15 : vector<8x512xi1>, vector<8x512xf32>
    %c17_i32 = arith.constant 17 : i32
    %17 = tpu.dynamic_rotate %16 by %c17_i32 dim 1 : vector<8x512xf32>, i32 -> vector<8x512xf32>
    %18 = vector.broadcast %4 : vector<1x512xf32> to vector<8x512xf32>
    %19 = arith.mulf %17, %18 : vector<8x512xf32>
    %c16_i32 = arith.constant 16 : i32
    %20 = tpu.dynamic_rotate %16 by %c16_i32 dim 1 : vector<8x512xf32>, i32 -> vector<8x512xf32>
    %21 = vector.broadcast %0 : vector<1x512xf32> to vector<8x512xf32>
    %22 = arith.mulf %20, %21 : vector<8x512xf32>
    %c15_i32 = arith.constant 15 : i32
    %23 = tpu.dynamic_rotate %16 by %c15_i32 dim 1 : vector<8x512xf32>, i32 -> vector<8x512xf32>
    %24 = vector.broadcast %5 : vector<1x512xf32> to vector<8x512xf32>
    %25 = arith.mulf %23, %24 : vector<8x512xf32>
    %c1_i32 = arith.constant 1 : i32
    %26 = tpu.dynamic_rotate %16 by %c1_i32 dim 1 : vector<8x512xf32>, i32 -> vector<8x512xf32>
    %27 = vector.broadcast %2 : vector<1x512xf32> to vector<8x512xf32>
    %28 = arith.mulf %26, %27 : vector<8x512xf32>
    %c511_i32 = arith.constant 511 : i32
    %29 = tpu.dynamic_rotate %16 by %c511_i32 dim 1 : vector<8x512xf32>, i32 -> vector<8x512xf32>
    %30 = vector.broadcast %3 : vector<1x512xf32> to vector<8x512xf32>
    %31 = arith.mulf %29, %30 : vector<8x512xf32>
    %c497_i32 = arith.constant 497 : i32
    %32 = tpu.dynamic_rotate %16 by %c497_i32 dim 1 : vector<8x512xf32>, i32 -> vector<8x512xf32>
    %33 = vector.broadcast %6 : vector<1x512xf32> to vector<8x512xf32>
    %34 = arith.mulf %32, %33 : vector<8x512xf32>
    %c496_i32 = arith.constant 496 : i32
    %35 = tpu.dynamic_rotate %16 by %c496_i32 dim 1 : vector<8x512xf32>, i32 -> vector<8x512xf32>
    %36 = vector.broadcast %1 : vector<1x512xf32> to vector<8x512xf32>
    %37 = arith.mulf %35, %36 : vector<8x512xf32>
    %c495_i32 = arith.constant 495 : i32
    %38 = tpu.dynamic_rotate %16 by %c495_i32 dim 1 : vector<8x512xf32>, i32 -> vector<8x512xf32>
    %39 = vector.broadcast %7 : vector<1x512xf32> to vector<8x512xf32>
    %40 = arith.mulf %38, %39 : vector<8x512xf32>
    %41 = tpu.concatenate %19, %22, %25, %28, %16, %31, %34, %37, %40 in 0 : vector<8x512xf32>, vector<8x512xf32>, vector<8x512xf32>, vector<8x512xf32>, vector<8x512xf32>, vector<8x512xf32>, vector<8x512xf32>, vector<8x512xf32>, vector<8x512xf32> -> vector<72x512xf32>
    %c0_14 = arith.constant 0 : index
    %c0_15 = arith.constant 0 : index
    %42 = vector.load %arg7[%c0_14, %c0_15] : memref<8x72xf32, #tpu.memory_space<vmem>>, vector<8x72xf32>
    %cst_16 = arith.constant dense<0.000000e+00> : vector<8x512xf32>
    %43 = tpu.matmul %42, %41, %cst_16 {dimension_numbers = #tpu.dot_dimension_numbers<[1], [0], [0], [1], [0, 0, 1, 1], [], []>} : vector<8x72xf32>, vector<72x512xf32>, vector<8x512xf32> -> vector<8x512xf32>
    %c0_17 = arith.constant 0 : index
    %c0_18 = arith.constant 0 : index
    %44 = vector.load %arg8[%c0_17, %c0_18] : memref<8x1xf32, #tpu.memory_space<vmem>>, vector<8x1xf32>
    %45 = vector.broadcast %44 : vector<8x1xf32> to vector<8x512xf32>
    %46 = arith.addf %43, %45 : vector<8x512xf32>
    %c0_19 = arith.constant 0 : index
    %c0_20 = arith.constant 0 : index
    %47 = vector.load %arg9[%c0_19, %c0_20] : memref<8x1xf32, #tpu.memory_space<vmem>>, vector<8x1xf32>
    %cst_21 = arith.constant 0.000000e+00 : f32
    %48 = vector.broadcast %cst_21 : f32 to vector<8x512xf32>
    %49 = arith.cmpf ogt, %46, %48 : vector<8x512xf32>
    %50 = vector.broadcast %47 : vector<8x1xf32> to vector<8x512xf32>
    %51 = arith.mulf %46, %50 : vector<8x512xf32>
    %52 = arith.select %49, %46, %51 : vector<8x512xi1>, vector<8x512xf32>
    %c17_i32_22 = arith.constant 17 : i32
    %53 = tpu.dynamic_rotate %52 by %c17_i32_22 dim 1 : vector<8x512xf32>, i32 -> vector<8x512xf32>
    %54 = vector.broadcast %4 : vector<1x512xf32> to vector<8x512xf32>
    %55 = arith.mulf %53, %54 : vector<8x512xf32>
    %c16_i32_23 = arith.constant 16 : i32
    %56 = tpu.dynamic_rotate %52 by %c16_i32_23 dim 1 : vector<8x512xf32>, i32 -> vector<8x512xf32>
    %57 = vector.broadcast %0 : vector<1x512xf32> to vector<8x512xf32>
    %58 = arith.mulf %56, %57 : vector<8x512xf32>
    %c15_i32_24 = arith.constant 15 : i32
    %59 = tpu.dynamic_rotate %52 by %c15_i32_24 dim 1 : vector<8x512xf32>, i32 -> vector<8x512xf32>
    %60 = vector.broadcast %5 : vector<1x512xf32> to vector<8x512xf32>
    %61 = arith.mulf %59, %60 : vector<8x512xf32>
    %c1_i32_25 = arith.constant 1 : i32
    %62 = tpu.dynamic_rotate %52 by %c1_i32_25 dim 1 : vector<8x512xf32>, i32 -> vector<8x512xf32>
    %63 = vector.broadcast %2 : vector<1x512xf32> to vector<8x512xf32>
    %64 = arith.mulf %62, %63 : vector<8x512xf32>
    %c511_i32_26 = arith.constant 511 : i32
    %65 = tpu.dynamic_rotate %52 by %c511_i32_26 dim 1 : vector<8x512xf32>, i32 -> vector<8x512xf32>
    %66 = vector.broadcast %3 : vector<1x512xf32> to vector<8x512xf32>
    %67 = arith.mulf %65, %66 : vector<8x512xf32>
    %c497_i32_27 = arith.constant 497 : i32
    %68 = tpu.dynamic_rotate %52 by %c497_i32_27 dim 1 : vector<8x512xf32>, i32 -> vector<8x512xf32>
    %69 = vector.broadcast %6 : vector<1x512xf32> to vector<8x512xf32>
    %70 = arith.mulf %68, %69 : vector<8x512xf32>
    %c496_i32_28 = arith.constant 496 : i32
    %71 = tpu.dynamic_rotate %52 by %c496_i32_28 dim 1 : vector<8x512xf32>, i32 -> vector<8x512xf32>
    %72 = vector.broadcast %1 : vector<1x512xf32> to vector<8x512xf32>
    %73 = arith.mulf %71, %72 : vector<8x512xf32>
    %c495_i32_29 = arith.constant 495 : i32
    %74 = tpu.dynamic_rotate %52 by %c495_i32_29 dim 1 : vector<8x512xf32>, i32 -> vector<8x512xf32>
    %75 = vector.broadcast %7 : vector<1x512xf32> to vector<8x512xf32>
    %76 = arith.mulf %74, %75 : vector<8x512xf32>
    %77 = tpu.concatenate %55, %58, %61, %64, %52, %67, %70, %73, %76 in 0 : vector<8x512xf32>, vector<8x512xf32>, vector<8x512xf32>, vector<8x512xf32>, vector<8x512xf32>, vector<8x512xf32>, vector<8x512xf32>, vector<8x512xf32>, vector<8x512xf32> -> vector<72x512xf32>
    %c0_30 = arith.constant 0 : index
    %c0_31 = arith.constant 0 : index
    %78 = vector.load %arg10[%c0_30, %c0_31] : memref<8x72xf32, #tpu.memory_space<vmem>>, vector<8x72xf32>
    %cst_32 = arith.constant dense<0.000000e+00> : vector<8x512xf32>
    %79 = tpu.matmul %78, %77, %cst_32 {dimension_numbers = #tpu.dot_dimension_numbers<[1], [0], [0], [1], [0, 0, 1, 1], [], []>} : vector<8x72xf32>, vector<72x512xf32>, vector<8x512xf32> -> vector<8x512xf32>
    %80 = arith.addf %79, %10 : vector<8x512xf32>
    %c0_33 = arith.constant 0 : index
    %c0_34 = arith.constant 0 : index
    %81 = vector.load %arg12[%c0_33, %c0_34] : memref<8x1xf32, #tpu.memory_space<vmem>>, vector<8x1xf32>
    %82 = vector.broadcast %81 : vector<8x1xf32> to vector<8x512xf32>
    %83 = arith.addf %80, %82 : vector<8x512xf32>
    %c0_35 = arith.constant 0 : index
    %c0_36 = arith.constant 0 : index
    %84 = vector.load %arg13[%c0_35, %c0_36] : memref<8x512xf32, #tpu.memory_space<vmem>>, vector<8x512xf32>
    tpu.vector_store %arg13[%c0_35, %c0_36], %83 {strides = array<i32>} : memref<8x512xf32, #tpu.memory_space<vmem>>, vector<8x512xf32>,
    return
  }
  func.func @transform_0(%arg0: i32) -> (i32, i32) {
    %c0_i32 = arith.constant 0 : i32
    %c0_i32_0 = arith.constant 0 : i32
    return %c0_i32, %arg0 : i32, i32
  }
  func.func @transform_1(%arg0: i32) -> (i32, i32) {
    %c0_i32 = arith.constant 0 : i32
    %c0_i32_0 = arith.constant 0 : i32
    %c0_i32_1 = arith.constant 0 : i32
    return %c0_i32, %c0_i32_0 : i32, i32
  }
  func.func @transform_2(%arg0: i32) -> (i32, i32) {
    %c0_i32 = arith.constant 0 : i32
    %c0_i32_0 = arith.constant 0 : i32
    %c0_i32_1 = arith.constant 0 : i32
    return %c0_i32, %c0_i32_0 : i32, i32
  }
  func.func @transform_3(%arg0: i32) -> (i32, i32) {
    %c0_i32 = arith.constant 0 : i32
    %c0_i32_0 = arith.constant 0 : i32
    %c0_i32_1 = arith.constant 0 : i32
    return %c0_i32, %c0_i32_0 : i32, i32
  }
  func.func @transform_4(%arg0: i32) -> (i32, i32) {
    %c0_i32 = arith.constant 0 : i32
    %c0_i32_0 = arith.constant 0 : i32
    %c0_i32_1 = arith.constant 0 : i32
    return %c0_i32, %c0_i32_0 : i32, i32
  }
  func.func @transform_5(%arg0: i32) -> (i32, i32) {
    %c0_i32 = arith.constant 0 : i32
    %c0_i32_0 = arith.constant 0 : i32
    %c0_i32_1 = arith.constant 0 : i32
    return %c0_i32, %c0_i32_0 : i32, i32
  }
  func.func @transform_6(%arg0: i32) -> (i32, i32) {
    %c0_i32 = arith.constant 0 : i32
    %c0_i32_0 = arith.constant 0 : i32
    %c0_i32_1 = arith.constant 0 : i32
    return %c0_i32, %c0_i32_0 : i32, i32
  }
  func.func @transform_7(%arg0: i32) -> (i32, i32) {
    %c0_i32 = arith.constant 0 : i32
    %c0_i32_0 = arith.constant 0 : i32
    %c0_i32_1 = arith.constant 0 : i32
    return %c0_i32, %c0_i32_0 : i32, i32
  }
  func.func @transform_8(%arg0: i32) -> (i32, i32) {
    %c0_i32 = arith.constant 0 : i32
    %c0_i32_0 = arith.constant 0 : i32
    %c0_i32_1 = arith.constant 0 : i32
    return %c0_i32, %c0_i32_0 : i32, i32
  }
  func.func @transform_9(%arg0: i32) -> (i32, i32) {
    %c0_i32 = arith.constant 0 : i32
    %c0_i32_0 = arith.constant 0 : i32
    %c0_i32_1 = arith.constant 0 : i32
    return %c0_i32, %c0_i32_0 : i32, i32
  }
  func.func @transform_10(%arg0: i32) -> (i32, i32) {
    %c0_i32 = arith.constant 0 : i32
    %c0_i32_0 = arith.constant 0 : i32
    %c0_i32_1 = arith.constant 0 : i32
    return %c0_i32, %c0_i32_0 : i32, i32
  }
  func.func @transform_11(%arg0: i32) -> (i32, i32) {
    %c0_i32 = arith.constant 0 : i32
    %c0_i32_0 = arith.constant 0 : i32
    %c0_i32_1 = arith.constant 0 : i32
    return %c0_i32, %c0_i32_0 : i32, i32
  }
  func.func @transform_12(%arg0: i32) -> (i32, i32) {
    %c0_i32 = arith.constant 0 : i32
    %c0_i32_0 = arith.constant 0 : i32
    return %c0_i32, %arg0 : i32, i32
  }
}

</mosaic_0001>

<bundles_post_ra>
// kernel: tpu_custom_call.1
= control target key start
LH: loop header
LB: loop body
LE: loop exit
PB: predicated region body
PF: predicated region fallthrough
CT: control target
= control target key end

     0   :  { %17 = vsyncpa [#allocation3], 0  ;;  %s1914_s0 = inlined_call_operand.vmem [shape: f32[8,512], index: 0, kind: input, shape index: {}]   ;;  %s1915_s1 = inlined_call_operand.hbm [shape: f32[1,512], index: 1, kind: input, shape index: {}]   ;;  %s1916_s2 = inlined_call_operand.hbm [shape: f32[1,512], index: 2, kind: input, shape index: {}]   ;;  %s1917_s3 = inlined_call_operand.hbm [shape: f32[1,512], index: 3, kind: input, shape index: {}]   ;;  %s1918_s4 = inlined_call_operand.hbm [shape: f32[1,512], index: 4, kind: input, shape index: {}]   ;;  %s1919_s5 = inlined_call_operand.vmem [shape: f32[8,1], index: 5, kind: input, shape index: {}]   ;;  %s1920_s6 = inlined_call_operand.vmem [shape: f32[8,72], index: 6, kind: input, shape index: {}]   ;;  %s1921_s7 = inlined_call_operand.vmem [shape: f32[8,1], index: 7, kind: input, shape index: {}]   ;;  %s1922_s8 = inlined_call_operand.vmem [shape: f32[8,1], index: 8, kind: input, shape index: {}]   ;;  %s1923_s9 = inlined_call_operand.vmem [shape: f32[8,72], index: 9, kind: input, shape index: {}]   ;;  %s1924_s10 = inlined_call_operand.vmem [shape: f32[8,8], index: 10, kind: input, shape index: {}]   ;;  %s1925_s11 = inlined_call_operand.vmem [shape: f32[8,1], index: 11, kind: input, shape index: {}]   ;;  %s1926_s12 = inlined_call_operand.hbm [shape: f32[8,512], index: 12, kind: output, shape index: {}]  }
   0x1   :  { %18 = vsyncpa [#allocation6], 0 }
   0x2   :  { %19 = vsyncpa [#allocation9], 0 }
   0x3   :  { %20 = vsyncpa [#allocation4], 0  ;;  %s1257_s21 = smov [#allocation5]   ;;  %s1258_s23 = smov [#allocation2]  }
   0x4   :  { %s39_s22 = sshll.u32 %s1257_s21, 4  ;;  %s29_s24 = sshll.u32 %s1258_s23, 4  ;;  %s40_s22 = int_to_ptr.vmem [resolvable:$true] %s39_s22  ;;  %s30_s24 = int_to_ptr.vmem [resolvable:$true] %s29_s24 }
   0x5   :  { %s1139_s27 = scalar_lea.hbm %s1916_s2, 64 }
   0x6   :  { %p1140_p0 = scmp.ne.s32.totalorder %s1916_s2, %s1139_s27  ;;  %p1143_p1 = scmp.lt.u32.totalorder %s1139_s27, %s1916_s2 }
   0x8   :  { %p1145_p2 = pnand %p1143_p1, %p1140_p0 }
   0xa   :  { %1148 = shalt.err (!%p1145_p2)
}
   0xb   :  { %s1149_s14 = scalar_lea.vmem %s40_s22, 64  ;;  %p1154_p4 = scmp.lt.s32.totalorder %s40_s22, %s40_s22 }
   0xc   :  { %p1150_p3 = scmp.ne.s32.totalorder %s40_s22, %s1149_s14  ;;  %p1155_p5 = scmp.lt.s32.totalorder %s1149_s14, %s1149_s14 }
   0xe   :  { %p1156_p6 = por %p1155_p5, %p1154_p4 }
  0x10   :  { %p1157_p7 = pnand %p1156_p6, %p1150_p3 }
  0x12   :  { %1160 = shalt.err (!%p1157_p7)
}
  0x13   :  { %42 = dma.hbm_to_vmem [thread:$0]  %s1916_s2, 64, %s40_s22, [#allocation6]  }
  0x14   :  { %s1161_s19 = scalar_lea.hbm %s1915_s1, 64 }
  0x15   :  { %p1162_p8 = scmp.ne.s32.totalorder %s1915_s1, %s1161_s19  ;;  %p1165_p9 = scmp.lt.u32.totalorder %s1161_s19, %s1915_s1 }
  0x17   :  { %p1167_p10 = pnand %p1165_p9, %p1162_p8 }
  0x19   :  { %1170 = shalt.err (!%p1167_p10)
}
  0x1a   :  { %s1171_s26 = scalar_lea.vmem %s30_s24, 64  ;;  %p1176_p12 = scmp.lt.s32.totalorder %s30_s24, %s30_s24 }
  0x1b   :  { %p1172_p11 = scmp.ne.s32.totalorder %s30_s24, %s1171_s26  ;;  %p1177_p13 = scmp.lt.s32.totalorder %s1171_s26, %s1171_s26 }
  0x1d   :  { %p1178_p0 = por %p1177_p13, %p1176_p12 }
  0x1f   :  { %p1179_p1 = pnand %p1178_p0, %p1172_p11 }
  0x21   :  { %1182 = shalt.err (!%p1179_p1)
}
  0x22   :  { %32 = dma.hbm_to_vmem [thread:$0]  %s1915_s1, 64, %s30_s24, [#allocation3]  }
  0x23   :  { %s1259_s27 = smov [#allocation7]   ;;  %s1260_s29 = smov [#allocation8]  }
  0x24   :  { %s49_s28 = sshll.u32 %s1259_s27, 4  ;;  %s59_s30 = sshll.u32 %s1260_s29, 4  ;;  %s50_s28 = int_to_ptr.vmem [resolvable:$true] %s49_s28  ;;  %s60_s30 = int_to_ptr.vmem [resolvable:$true] %s59_s30 }
  0x25   :  { %s1183_s15 = scalar_lea.hbm %s1917_s3, 64 }
  0x26   :  { %p1184_p2 = scmp.ne.s32.totalorder %s1917_s3, %s1183_s15  ;;  %p1187_p3 = scmp.lt.u32.totalorder %s1183_s15, %s1917_s3 }
  0x28   :  { %p1189_p4 = pnand %p1187_p3, %p1184_p2 }
  0x2a   :  { %1192 = shalt.err (!%p1189_p4)
}
  0x2b   :  { %s1193_s1 = scalar_lea.vmem %s50_s28, 64  ;;  %p1198_p6 = scmp.lt.s32.totalorder %s50_s28, %s50_s28 }
  0x2c   :  { %p1194_p5 = scmp.ne.s32.totalorder %s50_s28, %s1193_s1  ;;  %p1199_p7 = scmp.lt.s32.totalorder %s1193_s1, %s1193_s1 }
  0x2e   :  { %p1200_p8 = por %p1199_p7, %p1198_p6 }
  0x30   :  { %p1201_p9 = pnand %p1200_p8, %p1194_p5 }
  0x32   :  { %1204 = shalt.err (!%p1201_p9)
}
  0x33   :  { %52 = dma.hbm_to_vmem [thread:$0]  %s1917_s3, 64, %s50_s28, [#allocation6]  }
  0x34   :  { %s1205_s25 = scalar_lea.hbm %s1918_s4, 64 }
  0x35   :  { %p1206_p10 = scmp.ne.s32.totalorder %s1918_s4, %s1205_s25  ;;  %p1209_p11 = scmp.lt.u32.totalorder %s1205_s25, %s1918_s4 }
  0x37   :  { %p1211_p12 = pnand %p1209_p11, %p1206_p10 }
  0x39   :  { %1214 = shalt.err (!%p1211_p12)
}
  0x3a   :  { %s1215_s29 = scalar_lea.vmem %s60_s30, 64  ;;  %p1220_p0 = scmp.lt.s32.totalorder %s60_s30, %s60_s30 }
  0x3b   :  { %p1216_p13 = scmp.ne.s32.totalorder %s60_s30, %s1215_s29  ;;  %p1221_p1 = scmp.lt.s32.totalorder %s1215_s29, %s1215_s29 }
  0x3d   :  { %p1222_p2 = por %p1221_p1, %p1220_p0 }
  0x3f   :  { %p1223_p3 = pnand %p1222_p2, %p1216_p13 }
  0x41   :  { %1226 = shalt.err (!%p1223_p3)
}
  0x42   :  { %62 = dma.hbm_to_vmem [thread:$0]  %s1918_s4, 64, %s60_s30, [#allocation9]  }
  0x43   :  { %1249 = dma.done.wait [#allocation3], 64  }
  0x44   :  { %1250 = vsyncadd [#allocation3], 4294967232 }
  0x45   :  { %1251 = dma.done.wait [#allocation6], 128  }
  0x46   :  { %1252 = vsyncadd [#allocation6], 4294967168 }
  0x47   :  { %1253 = dma.done.wait [#allocation9], 64  }
  0x48   :  { %1254 = vsyncadd [#allocation9], 4294967232  ;;  %v1261_v0 = vmov 0   ;;  %v248_v1 = vld [vmem:[%s1919_s5] sm:$0xff]  ;;  %v98_v2 = vld [vmem:[%s1914_s0 + $0x8] sm:$0xff]  ;;  %s1262_s5 = smov 17   ;;  %v274_v19 = vlaneseq }
  0x49   :  { %1137 = vset.pattern.permute.xlu0 %v1261_v0  ;;  %1138 = vset.pattern.permute.xlu1 %v1261_v0  ;;  %v97_v3 = vld [vmem:[%s1914_s0] sm:$0xff]  ;;  %v100_v4 = vld [vmem:[%s1914_s0 + $0x18] sm:$0xff]  ;;  %v99_v5 = vld [vmem:[%s1914_s0 + $0x10] sm:$0xff]  ;;  %vm250_vm1 = vcmp.gt.f32.partialorder %v98_v2, 0.0  ;;  %v1263_v15 = vmov 0.0   ;;  %vm102_vm4 = vcmask 64512  }
  0x4a   :  { %255 = vperm.xlu0 %1137, %v248_v1   ;;  %106 = vmatprep.subr.mxu0 %v98_v2  ;;  %vm249_vm0 = vcmp.gt.f32.partialorder %v97_v3, 0.0  ;;  %vm251_vm2 = vcmp.gt.f32.partialorder %v99_v5, 0.0  ;;  %vm252_vm3 = vcmp.gt.f32.partialorder %v100_v4, 0.0  ;;  %v101_v16 = vld [vmem:[%s1924_s10] sm:$0xff]  ;;  %s1264_s20 = smov 16   ;;  %s1265_s10 = smov 15  }
  0x4b   :  { %107 = vmatpush1.msra.mxu0 %v97_v3  ;;  %177 = vmatprep.subr.mxu1 %v100_v4  ;;  %s1266_s21 = smov 1   ;;  %s1267_s23 = smov 127   ;;  %v725_v17 = vld [vmem:[%s1922_s8] sm:$0xff]  ;;  %v283_v20 = vshrl.u32 %v274_v19, 7  ;;  %v1485_v22 = vld [vmem:[#allocation7] sm:$0xf] }
  0x4c   :  { %178 = vmatpush1.msra.mxu1 %v99_v5  ;;  %170 = vmatprep.mubr.f32.mxu0 %v1263_v15  ;;  %s1268_s25 = smov 113   ;;  %s1269_s26 = smov 112   ;;  %v573_v18 = vld [vmem:[%s1921_s7] sm:$0xff]  ;;  %v1487_v24 = vand.u32 127, %v274_v19  ;;  %v1548_v62 = vld [vmem:[#allocation8] sm:$0xf] }
  0x4d   :  { %241 = vmatprep.mubr.f32.mxu1 %v1263_v15  ;;  %1048 = vmatmul.mubr.msk.f32.vlgmr.msra.gmra.mrb[0].mxu0 %vm102_vm4, %v101_v16  ;;  %s1270_s2 = smov 111   ;;  %v89_v21 = vld [vmem:[#allocation2] sm:$0xf]  ;;  %v1489_v26 = vsub.s32 1, %v283_v20  ;;  %v1493_v28 = vsub.s32 2, %v283_v20  ;;  %v1495_v30 = vsub.s32 0, %v283_v20 }
  0x4e   :  { %1049 = vmatmul.mubr.msk.f32.vlgmr.msra.gmra.mrb[0].mxu1 %vm102_vm4, %v101_v16  ;;  %647 = vmatprep.mubr.f32.mxu0 %v1263_v15  ;;  %v93_v27 = vmul.f32 %v1485_v22, %v89_v21  ;;  %vm276_vm5 = vcmp.lt.s32.totalorder %v1487_v24, 17  ;;  %v1497_v31 = vsub.s32 3, %v283_v20  ;;  %vm314_vm6 = vcmp.lt.s32.totalorder %v1487_v24, 16  ;;  %s1271_s14 = smov [#allocation10]  }
  0x4f   :  { %718 = vmatprep.mubr.f32.mxu1 %v1263_v15  ;;  %v1504_v34 = vrot.slane %v89_v21, %v1489_v26  ;;  %v1522_v43 = vrot.slane %v89_v21, %v1493_v28  ;;  %v1525_v44 = vrot.slane %v89_v21, %v1495_v30  ;;  %vm352_vm7 = vcmp.lt.s32.totalorder %v1487_v24, 15  ;;  %s1037_s15 = sshll.u32 %s1271_s14, 4  ;;  %s1038_s15 = int_to_ptr.vmem [resolvable:$true] %s1037_s15 }
  0x50   :  { %v1500_v33 = vrot.slane %v93_v27, %v1489_v26  ;;  %v1509_v36 = vrot.slane %v93_v27, %v1493_v28  ;;  %v1512_v37 = vrot.slane %v93_v27, %v1495_v30  ;;  %v1515_v38 = vrot.slane %v93_v27, %v1497_v31  ;;  %p1232_p5 = scmp.lt.s32.totalorder %s1038_s15, %s1038_s15 }
  0x51   :  { %v1532_v48 = vrot.slane %v89_v21, %v1497_v31  ;;  %vm390_vm8 = vcmp.lt.s32.totalorder %v1487_v24, 1  ;;  %vm428_vm9 = vcmp.lt.s32.totalorder %v1487_v24, 127  ;;  %vm504_vm10 = vcmp.lt.s32.totalorder %v1487_v24, 112 }
  0x52   :  { %vm466_vm11 = vcmp.lt.s32.totalorder %v1487_v24, 113  ;;  %vm542_vm12 = vcmp.lt.s32.totalorder %v1487_v24, 111  ;;  %vm579_vm13 = vcmask 588800  }
  0xc9   :  { %v256_v6 = vpop.permute.xlu0 %255 }
  0xca   :  { %v258_v7 = vmul.f32 %v256_v6, %v97_v3  ;;  %v259_v8 = vmul.f32 %v256_v6, %v98_v2  ;;  %v260_v9 = vmul.f32 %v256_v6, %v99_v5  ;;  %v261_v10 = vmul.f32 %v256_v6, %v100_v4 }
  0xcc   :  { %v1400_v11 = vsel %vm249_vm0, %v97_v3, %v258_v7  ;;  %v1402_v12 = vsel %vm250_vm1, %v98_v2, %v259_v8  ;;  %v1408_v13 = vsel %vm251_vm2, %v99_v5, %v260_v9  ;;  %v1410_v14 = vsel %vm252_vm3, %v100_v4, %v261_v10 }
  0xcd   :  { %268 = vrot.lane.b32.xlu1 %v1402_v12, %s1262_s5  ;;  %266 = vrot.lane.b32.xlu0 %v1400_v11, %s1262_s5  ;;  %v94_v4 = vmul.f32 %v1548_v62, %v89_v21  ;;  %v1558_v8 = vrot.slane %v1485_v22, %v1489_v26 }
  0xcf   :  { %v1553_v7 = vrot.slane %v94_v4, %v1489_v26  ;;  %v1563_v10 = vrot.slane %v94_v4, %v1493_v28  ;;  %v1566_v16 = vrot.slane %v94_v4, %v1495_v30 }
  0xd1   :  { %270 = vrot.lane.b32.xlu1 %v1408_v13, %s1262_s5  ;;  %272 = vrot.lane.b32.xlu0 %v1410_v14, %s1262_s5 }
  0xd5   :  { %306 = vrot.lane.b32.xlu1 %v1400_v11, %s1264_s20  ;;  %308 = vrot.lane.b32.xlu0 %v1402_v12, %s1264_s20 }
  0xd9   :  { %310 = vrot.lane.b32.xlu1 %v1408_v13, %s1264_s20  ;;  %312 = vrot.lane.b32.xlu0 %v1410_v14, %s1264_s20 }
  0xdd   :  { %344 = vrot.lane.b32.xlu1 %v1400_v11, %s1265_s10  ;;  %346 = vrot.lane.b32.xlu0 %v1402_v12, %s1265_s10 }
  0xe1   :  { %348 = vrot.lane.b32.xlu1 %v1408_v13, %s1265_s10  ;;  %350 = vrot.lane.b32.xlu0 %v1410_v14, %s1265_s10 }
  0xe5   :  { %382 = vrot.lane.b32.xlu1 %v1400_v11, %s1266_s21  ;;  %384 = vrot.lane.b32.xlu0 %v1402_v12, %s1266_s21 }
  0xe9   :  { %386 = vrot.lane.b32.xlu1 %v1408_v13, %s1266_s21  ;;  %388 = vrot.lane.b32.xlu0 %v1410_v14, %s1266_s21 }
  0xed   :  { %420 = vrot.lane.b32.xlu1 %v1400_v11, %s1267_s23  ;;  %422 = vrot.lane.b32.xlu0 %v1402_v12, %s1267_s23 }
  0xf1   :  { %424 = vrot.lane.b32.xlu1 %v1408_v13, %s1267_s23  ;;  %426 = vrot.lane.b32.xlu0 %v1410_v14, %s1267_s23 }
  0xf5   :  { %458 = vrot.lane.b32.xlu1 %v1400_v11, %s1268_s25  ;;  %460 = vrot.lane.b32.xlu0 %v1402_v12, %s1268_s25 }
  0xf9   :  { %462 = vrot.lane.b32.xlu1 %v1408_v13, %s1268_s25  ;;  %464 = vrot.lane.b32.xlu0 %v1410_v14, %s1268_s25 }
  0xfd   :  { %496 = vrot.lane.b32.xlu1 %v1400_v11, %s1269_s26  ;;  %498 = vrot.lane.b32.xlu0 %v1402_v12, %s1269_s26 }
 0x101   :  { %500 = vrot.lane.b32.xlu1 %v1408_v13, %s1269_s26  ;;  %502 = vrot.lane.b32.xlu0 %v1410_v14, %s1269_s26 }
 0x105   :  { %534 = vrot.lane.b32.xlu1 %v1400_v11, %s1270_s2  ;;  %536 = vrot.lane.b32.xlu0 %v1402_v12, %s1270_s2 }
 0x109   :  { %538 = vrot.lane.b32.xlu1 %v1408_v13, %s1270_s2  ;;  %540 = vrot.lane.b32.xlu0 %v1410_v14, %s1270_s2 }
 0x10d   :  { %732 = vperm.xlu0 %1137, %v725_v17   ;;  %576 = vperm.xlu1 %1138, %v573_v18   ;;  %v1569_v17 = vrot.slane %v94_v4, %v1497_v31 }
 0x13f   :  { %v269_v23 = vpop.permute.xlu1 %268  ;;  %v267_v25 = vpop.permute.xlu0 %266 }
 0x140   :  { %v279_v35 = vsel %vm276_vm5, %v267_v25, %v269_v23 }
 0x141   :  { %v303_v45 = vmul.f32 %v1500_v33, %v279_v35  ;;  %v1589_v35 = vrot.slane %v1485_v22, %v1497_v31 }
 0x143   :  { %v271_v29 = vpop.permute.xlu1 %270  ;;  %v273_v32 = vpop.permute.xlu0 %272 }
 0x144   :  { %v278_v41 = vsel %vm276_vm5, %v269_v23, %v271_v29  ;;  %v280_v46 = vsel %vm276_vm5, %v273_v32, %v267_v25  ;;  %v277_v49 = vsel %vm276_vm5, %v271_v29, %v273_v32  ;;  %v1577_v23 = vrot.slane %v1485_v22, %v1493_v28 }
 0x145   :  { %v304_v50 = vmul.f32 %v1509_v36, %v278_v41  ;;  %v302_v54 = vmul.f32 %v1512_v37, %v280_v46  ;;  %v305_v58 = vmul.f32 %v1515_v38, %v277_v49  ;;  %v1581_v25 = vrot.slane %v1485_v22, %v1495_v30 }
 0x147   :  { %v307_v39 = vpop.permute.xlu1 %306  ;;  %v309_v40 = vpop.permute.xlu0 %308 }
 0x148   :  { %v317_v42 = vsel %vm314_vm6, %v307_v39, %v309_v40 }
 0x149   :  { %v341_v47 = vmul.f32 %v1504_v34, %v317_v42 }
 0x14b   :  { %v311_v51 = vpop.permute.xlu1 %310  ;;  %v313_v52 = vpop.permute.xlu0 %312  ;;  %v1054_v53 = vpack.c.bf16 %v341_v47, %v303_v45 }
 0x14c   :  { %v316_v55 = vsel %vm314_vm6, %v309_v40, %v311_v51  ;;  %v315_v56 = vsel %vm314_vm6, %v311_v51, %v313_v52  ;;  %v318_v57 = vsel %vm314_vm6, %v313_v52, %v307_v39 }
 0x14d   :  { %v342_v59 = vmul.f32 %v1522_v43, %v316_v55  ;;  %v340_v60 = vmul.f32 %v1525_v44, %v318_v57  ;;  %v343_v61 = vmul.f32 %v1532_v48, %v315_v56  ;;  %1055 = vmatprep.subr.bf16.mxu0 %v1054_v53 }
 0x14f   :  { %v1072_v63 = vpack.c.bf16 %v342_v59, %v304_v50  ;;  %v1056_v0 = vpack.c.bf16 %v340_v60, %v302_v54  ;;  %v345_v1 = vpop.permute.xlu1 %344  ;;  %v347_v2 = vpop.permute.xlu0 %346  ;;  %v1070_v3 = vpack.c.bf16 %v343_v61, %v305_v58  ;;  %v1608_v60 = vrot.slane %v1548_v62, %v1495_v30 }
 0x150   :  { %v355_v9 = vsel %vm352_vm7, %v345_v1, %v347_v2  ;;  %v1612_v61 = vrot.slane %v1548_v62, %v1489_v26 }
 0x151   :  { %1057 = vmatpush1.bf16.msra.mxu0 %v1056_v0  ;;  %1071 = vmatprep.subr.bf16.mxu1 %v1070_v3  ;;  %v379_v27 = vmul.f32 %v1553_v7, %v355_v9  ;;  %v1618_v0 = vrot.slane %v1548_v62, %v1493_v28 }
 0x152   :  { %1073 = vmatpush1.bf16.msra.mxu1 %v1072_v63 }
 0x153   :  { %v349_v5 = vpop.permute.xlu1 %348  ;;  %v351_v6 = vpop.permute.xlu0 %350 }
 0x154   :  { %v354_v20 = vsel %vm352_vm7, %v347_v2, %v349_v5  ;;  %v356_v29 = vsel %vm352_vm7, %v351_v6, %v345_v1  ;;  %v353_v39 = vsel %vm352_vm7, %v349_v5, %v351_v6  ;;  %v1622_v1 = vrot.slane %v1548_v62, %v1497_v31 }
 0x155   :  { %v380_v40 = vmul.f32 %v1563_v10, %v354_v20  ;;  %v378_v46 = vmul.f32 %v1566_v16, %v356_v29  ;;  %v381_v51 = vmul.f32 %v1569_v17, %v353_v39 }
 0x157   :  { %v383_v18 = vpop.permute.xlu1 %382  ;;  %v385_v19 = vpop.permute.xlu0 %384 }
 0x158   :  { %v393_v21 = vsel %vm390_vm8, %v383_v18, %v385_v19 }
 0x159   :  { %v417_v32 = vmul.f32 %v1558_v8, %v393_v21 }
 0x15b   :  { %v387_v41 = vpop.permute.xlu1 %386  ;;  %v389_v42 = vpop.permute.xlu0 %388  ;;  %v1058_v45 = vpack.c.bf16 %v417_v32, %v379_v27 }
 0x15c   :  { %v392_v47 = vsel %vm390_vm8, %v385_v19, %v387_v41  ;;  %v391_v49 = vsel %vm390_vm8, %v387_v41, %v389_v42  ;;  %v394_v50 = vsel %vm390_vm8, %v389_v42, %v383_v18  ;;  %v90_v41 = vld [vmem:[#allocation5] sm:$0xf] }
 0x15d   :  { %v418_v52 = vmul.f32 %v1577_v23, %v392_v47  ;;  %v416_v53 = vmul.f32 %v1581_v25, %v394_v50  ;;  %v419_v54 = vmul.f32 %v1589_v35, %v391_v49  ;;  %1059 = vmatprep.subr.bf16.mxu0 %v1058_v45  ;;  %v1655_v50 = vrot.slane %v90_v41, %v1495_v30 }
 0x15f   :  { %v1076_v55 = vpack.c.bf16 %v418_v52, %v380_v40  ;;  %v1060_v56 = vpack.c.bf16 %v416_v53, %v378_v46  ;;  %v421_v57 = vpop.permute.xlu1 %420  ;;  %v423_v58 = vpop.permute.xlu0 %422  ;;  %v1074_v59 = vpack.c.bf16 %v419_v54, %v381_v51  ;;  %v95_v46 = vmul.f32 %v1485_v22, %v90_v41 }
 0x160   :  { %v431_v63 = vsel %vm428_vm9, %v421_v57, %v423_v58  ;;  %v1660_v52 = vrot.slane %v90_v41, %v1489_v26  ;;  %v1663_v53 = vrot.slane %v90_v41, %v1493_v28  ;;  %v1666_v54 = vrot.slane %v90_v41, %v1497_v31 }
 0x161   :  { %1061 = vmatpush1.bf16.msra.mxu0 %v1060_v56  ;;  %1075 = vmatprep.subr.bf16.mxu1 %v1074_v59  ;;  %v454_v4 = vmul.f32 %v1608_v60, %v431_v63  ;;  %v1652_v22 = vrot.slane %v95_v46, %v1497_v31 }
 0x162   :  { %1077 = vmatpush1.bf16.msra.mxu1 %v1076_v55  ;;  %v1669_v55 = vrot.slane %v95_v46, %v1495_v30 }
 0x163   :  { %v425_v2 = vpop.permute.xlu1 %424  ;;  %v427_v3 = vpop.permute.xlu0 %426  ;;  %v1064_v40 = vpack.c.bf16 %v454_v4, %v1400_v11 }
 0x164   :  { %v430_v5 = vsel %vm428_vm9, %v423_v58, %v425_v2  ;;  %v429_v6 = vsel %vm428_vm9, %v425_v2, %v427_v3  ;;  %v432_v9 = vsel %vm428_vm9, %v427_v3, %v421_v57 }
 0x165   :  { %v455_v18 = vmul.f32 %v1612_v61, %v430_v5  ;;  %v456_v19 = vmul.f32 %v1618_v0, %v429_v6  ;;  %v457_v20 = vmul.f32 %v1622_v1, %v432_v9 }
 0x167   :  { %v1080_v21 = vpack.c.bf16 %v456_v19, %v1408_v13  ;;  %v459_v27 = vpop.permute.xlu1 %458  ;;  %v461_v29 = vpop.permute.xlu0 %460  ;;  %v1062_v32 = vpack.c.bf16 %v455_v18, %v1402_v12  ;;  %v1078_v39 = vpack.c.bf16 %v457_v20, %v1410_v14  ;;  %v1642_v13 = vrot.slane %v95_v46, %v1489_v26 }
 0x168   :  { %v1645_v12 = vrot.slane %v95_v46, %v1493_v28  ;;  %v469_v57 = vsel %vm466_vm11, %v459_v27, %v461_v29 }
 0x169   :  { %1063 = vmatprep.subr.bf16.mxu0 %v1062_v32  ;;  %1079 = vmatprep.subr.bf16.mxu1 %v1078_v39 }
 0x16a   :  { %1065 = vmatpush1.bf16.msra.mxu0 %v1064_v40  ;;  %1081 = vmatpush1.bf16.msra.mxu1 %v1080_v21  ;;  %v492_v21 = vmul.f32 %v1669_v55, %v469_v57 }
 0x16b   :  { %v463_v42 = vpop.permute.xlu1 %462  ;;  %v465_v45 = vpop.permute.xlu0 %464 }
 0x16c   :  { %v468_v47 = vsel %vm466_vm11, %v461_v29, %v463_v42  ;;  %v467_v49 = vsel %vm466_vm11, %v463_v42, %v465_v45  ;;  %v470_v56 = vsel %vm466_vm11, %v465_v45, %v459_v27  ;;  %v96_v27 = vmul.f32 %v1548_v62, %v90_v41 }
 0x16d   :  { %v493_v58 = vmul.f32 %v1642_v13, %v468_v47  ;;  %v494_v59 = vmul.f32 %v1645_v12, %v467_v49  ;;  %v495_v9 = vmul.f32 %v1652_v22, %v470_v56 }
 0x16e   :  { %v1692_v46 = vrot.slane %v96_v27, %v1489_v26  ;;  %v1701_v62 = vrot.slane %v96_v27, %v1495_v30 }
 0x16f   :  { %v497_v11 = vpop.permute.xlu1 %496  ;;  %v499_v14 = vpop.permute.xlu0 %498 }
 0x170   :  { %v507_v51 = vsel %vm504_vm10, %v497_v11, %v499_v14 }
 0x171   :  { %v530_v3 = vmul.f32 %v1655_v50, %v507_v51 }
 0x173   :  { %v501_v63 = vpop.permute.xlu1 %500  ;;  %v503_v2 = vpop.permute.xlu0 %502  ;;  %v1068_v45 = vpack.c.bf16 %v530_v3, %v492_v21 }
 0x174   :  { %v506_v4 = vsel %vm504_vm10, %v499_v14, %v501_v63  ;;  %v505_v5 = vsel %vm504_vm10, %v501_v63, %v503_v2  ;;  %v508_v6 = vsel %vm504_vm10, %v503_v2, %v497_v11  ;;  %v1695_v11 = vrot.slane %v96_v27, %v1493_v28 }
 0x175   :  { %v531_v18 = vmul.f32 %v1660_v52, %v506_v4  ;;  %v532_v19 = vmul.f32 %v1663_v53, %v505_v5  ;;  %v533_v20 = vmul.f32 %v1666_v54, %v508_v6  ;;  %v1698_v14 = vrot.slane %v96_v27, %v1497_v31 }
 0x177   :  { %v1084_v29 = vpack.c.bf16 %v532_v19, %v494_v59  ;;  %v535_v32 = vpop.permute.xlu1 %534  ;;  %v537_v39 = vpop.permute.xlu0 %536  ;;  %v1066_v40 = vpack.c.bf16 %v531_v18, %v493_v58  ;;  %v1082_v42 = vpack.c.bf16 %v533_v20, %v495_v9  ;;  %v572_v58 = vld [vmem:[%s1920_s6] sm:$0xff] }
 0x178   :  { %v545_v41 = vsel %vm542_vm12, %v535_v32, %v537_v39 }
 0x179   :  { %1067 = vmatprep.subr.bf16.mxu0 %v1066_v40  ;;  %1083 = vmatprep.subr.bf16.mxu1 %v1082_v42  ;;  %v568_v57 = vmul.f32 %v1701_v62, %v545_v41  ;;  %v1017_v42 = vld [vmem:[%s1925_s11] sm:$0xff] }
 0x17a   :  { %1069 = vmatpush1.bf16.msra.mxu0 %v1068_v45  ;;  %1085 = vmatpush1.bf16.msra.mxu1 %v1084_v29 }
 0x17b   :  { %v539_v47 = vpop.permute.xlu1 %538  ;;  %v541_v49 = vpop.permute.xlu0 %540 }
 0x17c   :  { %v544_v26 = vsel %vm542_vm12, %v537_v39, %v539_v47  ;;  %v543_v28 = vsel %vm542_vm12, %v539_v47, %v541_v49  ;;  %v546_v31 = vsel %vm542_vm12, %v541_v49, %v535_v32 }
 0x17d   :  { %v569_v51 = vmul.f32 %v1692_v46, %v544_v26  ;;  %v570_v30 = vmul.f32 %v1695_v11, %v543_v28  ;;  %v571_v56 = vmul.f32 %v1698_v14, %v546_v31 }
 0x17f   :  { %599 = vmatprep.subr.mxu0 %v569_v51  ;;  %670 = vmatprep.subr.mxu1 %v571_v56 }
 0x180   :  { %600 = vmatpush1.msra.mxu0 %v568_v57  ;;  %671 = vmatpush1.msra.mxu1 %v570_v30 }
 0x181   :  { %1050 = vmatmul.mubr.msk.f32.vlgmr.msra.gmra.mrb[2].mxu0 %vm579_vm13, %v572_v58  ;;  %1051 = vmatmul.mubr.msk.f32.vlgmr.msra.gmra.mrb[2].mxu1 %vm579_vm13, %v572_v58 }
 0x182   :  { %939 = vmatprep.mubr.f32.mxu0 %v1263_v15  ;;  %1010 = vmatprep.mubr.f32.mxu1 %v1263_v15 }
 0x18c   :  { %v577_v59 = vpop.permute.xlu1 %576  ;;  %v733_v9 = vpop.permute.xlu0 %732 }
 0x254   :  { %v649_v63 = vpop.f32.mrb[2].mxu0  ;;  %v720_v2 = vpop.f32.mrb[2].mxu1 }
 0x255   :  { %v650_v3 = vadd.f32 %v649_v63, %v577_v59  ;;  %v721_v4 = vadd.f32 %v720_v2, %v577_v59  ;;  %v651_v5 = vpop.f32.mrb[3].mxu0  ;;  %v722_v6 = vpop.f32.mrb[3].mxu1 }
 0x256   :  { %v652_v18 = vadd.f32 %v651_v5, %v577_v59  ;;  %v723_v19 = vadd.f32 %v722_v6, %v577_v59 }
 0x257   :  { %vm726_vm14 = vcmp.gt.f32.partialorder %v650_v3, 0.0  ;;  %v735_v20 = vmul.f32 %v733_v9, %v650_v3  ;;  %v737_v29 = vmul.f32 %v733_v9, %v721_v4  ;;  %vm728_vm0 = vcmp.gt.f32.partialorder %v721_v4, 0.0 }
 0x258   :  { %vm727_vm15 = vcmp.gt.f32.partialorder %v652_v18, 0.0  ;;  %v736_v21 = vmul.f32 %v733_v9, %v652_v18  ;;  %v738_v15 = vmul.f32 %v733_v9, %v723_v19  ;;  %vm729_vm1 = vcmp.gt.f32.partialorder %v723_v19, 0.0 }
 0x259   :  { %v1722_v27 = vsel %vm726_vm14, %v650_v3, %v735_v20  ;;  %v1730_v39 = vsel %vm728_vm0, %v721_v4, %v737_v29 }
 0x25a   :  { %v1724_v32 = vsel %vm727_vm15, %v652_v18, %v736_v21  ;;  %743 = vrot.lane.b32.xlu1 %v1722_v27, %s1262_s5  ;;  %v1732_v40 = vsel %vm729_vm1, %v723_v19, %v738_v15 }
 0x25b   :  { %745 = vrot.lane.b32.xlu0 %v1724_v32, %s1262_s5 }
 0x25e   :  { %747 = vrot.lane.b32.xlu1 %v1730_v39, %s1262_s5 }
 0x25f   :  { %749 = vrot.lane.b32.xlu0 %v1732_v40, %s1262_s5 }
 0x262   :  { %759 = vrot.lane.b32.xlu1 %v1722_v27, %s1264_s20 }
 0x263   :  { %761 = vrot.lane.b32.xlu0 %v1724_v32, %s1264_s20 }
 0x266   :  { %763 = vrot.lane.b32.xlu1 %v1730_v39, %s1264_s20 }
 0x267   :  { %765 = vrot.lane.b32.xlu0 %v1732_v40, %s1264_s20 }
 0x26a   :  { %775 = vrot.lane.b32.xlu1 %v1722_v27, %s1265_s10 }
 0x26b   :  { %777 = vrot.lane.b32.xlu0 %v1724_v32, %s1265_s10 }
 0x26e   :  { %779 = vrot.lane.b32.xlu1 %v1730_v39, %s1265_s10 }
 0x26f   :  { %781 = vrot.lane.b32.xlu0 %v1732_v40, %s1265_s10 }
 0x272   :  { %791 = vrot.lane.b32.xlu1 %v1722_v27, %s1266_s21 }
 0x273   :  { %793 = vrot.lane.b32.xlu0 %v1724_v32, %s1266_s21 }
 0x276   :  { %795 = vrot.lane.b32.xlu1 %v1730_v39, %s1266_s21 }
 0x277   :  { %797 = vrot.lane.b32.xlu0 %v1732_v40, %s1266_s21 }
 0x27a   :  { %807 = vrot.lane.b32.xlu1 %v1722_v27, %s1267_s23 }
 0x27b   :  { %809 = vrot.lane.b32.xlu0 %v1724_v32, %s1267_s23 }
 0x27e   :  { %811 = vrot.lane.b32.xlu1 %v1730_v39, %s1267_s23 }
 0x27f   :  { %813 = vrot.lane.b32.xlu0 %v1732_v40, %s1267_s23 }
 0x282   :  { %823 = vrot.lane.b32.xlu1 %v1722_v27, %s1268_s25 }
 0x283   :  { %825 = vrot.lane.b32.xlu0 %v1724_v32, %s1268_s25 }
 0x286   :  { %827 = vrot.lane.b32.xlu1 %v1730_v39, %s1268_s25 }
 0x287   :  { %829 = vrot.lane.b32.xlu0 %v1732_v40, %s1268_s25 }
 0x28a   :  { %839 = vrot.lane.b32.xlu1 %v1722_v27, %s1269_s26 }
 0x28b   :  { %841 = vrot.lane.b32.xlu0 %v1724_v32, %s1269_s26 }
 0x28e   :  { %843 = vrot.lane.b32.xlu1 %v1730_v39, %s1269_s26 }
 0x28f   :  { %845 = vrot.lane.b32.xlu0 %v1732_v40, %s1269_s26 }
 0x292   :  { %855 = vrot.lane.b32.xlu1 %v1722_v27, %s1270_s2 }
 0x293   :  { %857 = vrot.lane.b32.xlu0 %v1724_v32, %s1270_s2 }
 0x296   :  { %859 = vrot.lane.b32.xlu1 %v1730_v39, %s1270_s2 }
 0x297   :  { %861 = vrot.lane.b32.xlu0 %v1732_v40, %s1270_s2 }
 0x29a   :  { %1020 = vperm.xlu1 %1138, %v1017_v42  }
 0x2cc   :  { %v744_v45 = vpop.permute.xlu1 %743 }
 0x2cd   :  { %v746_v41 = vpop.permute.xlu0 %745 }
 0x2ce   :  { %v753_v26 = vsel %vm276_vm5, %v744_v45, %v746_v41 }
 0x2cf   :  { %v756_v30 = vmul.f32 %v753_v26, %v1500_v33 }
 0x2d0   :  { %v748_v47 = vpop.permute.xlu1 %747 }
 0x2d1   :  { %v750_v49 = vpop.permute.xlu0 %749  ;;  %v752_v63 = vsel %vm276_vm5, %v746_v41, %v748_v47 }
 0x2d2   :  { %v751_v57 = vsel %vm276_vm5, %v748_v47, %v750_v49  ;;  %v754_v58 = vsel %vm276_vm5, %v750_v49, %v744_v45  ;;  %v757_v20 = vmul.f32 %v752_v63, %v1509_v36 }
 0x2d3   :  { %v755_v6 = vmul.f32 %v754_v58, %v1512_v37  ;;  %v758_v9 = vmul.f32 %v751_v57, %v1515_v38 }
 0x2d4   :  { %v760_v28 = vpop.permute.xlu1 %759 }
 0x2d5   :  { %v762_v31 = vpop.permute.xlu0 %761 }
 0x2d6   :  { %v769_v51 = vsel %vm314_vm6, %v760_v28, %v762_v31 }
 0x2d7   :  { %v772_v56 = vmul.f32 %v769_v51, %v1504_v34 }
 0x2d8   :  { %v764_v59 = vpop.permute.xlu1 %763 }
 0x2d9   :  { %v768_v2 = vsel %vm314_vm6, %v762_v31, %v764_v59  ;;  %v766_v3 = vpop.permute.xlu0 %765  ;;  %v1086_v4 = vpack.c.bf16 %v772_v56, %v756_v30 }
 0x2da   :  { %v773_v5 = vmul.f32 %v768_v2, %v1522_v43  ;;  %v767_v33 = vsel %vm314_vm6, %v764_v59, %v766_v3  ;;  %v770_v34 = vsel %vm314_vm6, %v766_v3, %v760_v28 }
 0x2db   :  { %v771_v18 = vmul.f32 %v770_v34, %v1525_v44  ;;  %v774_v19 = vmul.f32 %v767_v33, %v1532_v48  ;;  %1087 = vmatprep.subr.bf16.mxu0 %v1086_v4 }
 0x2dc   :  { %v776_v21 = vpop.permute.xlu1 %775  ;;  %v1104_v42 = vpack.c.bf16 %v773_v5, %v757_v20 }
 0x2dd   :  { %v1088_v29 = vpack.c.bf16 %v771_v18, %v755_v6  ;;  %v778_v43 = vpop.permute.xlu0 %777  ;;  %v1102_v15 = vpack.c.bf16 %v774_v19, %v758_v9 }
 0x2de   :  { %v785_v37 = vsel %vm352_vm7, %v776_v21, %v778_v43 }
 0x2df   :  { %1089 = vmatpush1.bf16.msra.mxu0 %v1088_v29  ;;  %1103 = vmatprep.subr.bf16.mxu1 %v1102_v15  ;;  %v788_v36 = vmul.f32 %v785_v37, %v1553_v7 }
 0x2e0   :  { %1105 = vmatpush1.bf16.msra.mxu1 %v1104_v42  ;;  %v780_v45 = vpop.permute.xlu1 %779 }
 0x2e1   :  { %v782_v41 = vpop.permute.xlu0 %781  ;;  %v784_v31 = vsel %vm352_vm7, %v778_v43, %v780_v45 }
 0x2e2   :  { %v783_v49 = vsel %vm352_vm7, %v780_v45, %v782_v41  ;;  %v786_v26 = vsel %vm352_vm7, %v782_v41, %v776_v21  ;;  %v789_v3 = vmul.f32 %v784_v31, %v1563_v10 }
 0x2e3   :  { %v787_v58 = vmul.f32 %v786_v26, %v1566_v16  ;;  %v790_v59 = vmul.f32 %v783_v49, %v1569_v17 }
 0x2e4   :  { %v792_v38 = vpop.permute.xlu1 %791 }
 0x2e5   :  { %v794_v44 = vpop.permute.xlu0 %793 }
 0x2e6   :  { %v801_v48 = vsel %vm390_vm8, %v792_v38, %v794_v44 }
 0x2e7   :  { %v804_v47 = vmul.f32 %v801_v48, %v1558_v8 }
 0x2e8   :  { %v796_v28 = vpop.permute.xlu1 %795 }
 0x2e9   :  { %v800_v51 = vsel %vm390_vm8, %v794_v44, %v796_v28  ;;  %v798_v30 = vpop.permute.xlu0 %797  ;;  %v1090_v56 = vpack.c.bf16 %v804_v47, %v788_v36 }
 0x2ea   :  { %v805_v57 = vmul.f32 %v800_v51, %v1577_v23  ;;  %v799_v7 = vsel %vm390_vm8, %v796_v28, %v798_v30  ;;  %v802_v8 = vsel %vm390_vm8, %v798_v30, %v792_v38 }
 0x2eb   :  { %v803_v63 = vmul.f32 %v802_v8, %v1581_v25  ;;  %v806_v2 = vmul.f32 %v799_v7, %v1589_v35  ;;  %1091 = vmatprep.subr.bf16.mxu0 %v1090_v56 }
 0x2ec   :  { %v808_v4 = vpop.permute.xlu1 %807  ;;  %v1108_v34 = vpack.c.bf16 %v805_v57, %v789_v3 }
 0x2ed   :  { %v1092_v5 = vpack.c.bf16 %v803_v63, %v787_v58  ;;  %v810_v23 = vpop.permute.xlu0 %809  ;;  %v1106_v33 = vpack.c.bf16 %v806_v2, %v790_v59 }
 0x2ee   :  { %v817_v6 = vsel %vm428_vm9, %v808_v4, %v810_v23 }
 0x2ef   :  { %1093 = vmatpush1.bf16.msra.mxu0 %v1092_v5  ;;  %1107 = vmatprep.subr.bf16.mxu1 %v1106_v33  ;;  %v819_v17 = vmul.f32 %v817_v6, %v1608_v60 }
 0x2f0   :  { %1109 = vmatpush1.bf16.msra.mxu1 %v1108_v34  ;;  %v812_v16 = vpop.permute.xlu1 %811 }
 0x2f1   :  { %v816_v25 = vsel %vm428_vm9, %v810_v23, %v812_v16  ;;  %v814_v35 = vpop.permute.xlu0 %813  ;;  %v1096_v60 = vpack.c.bf16 %v819_v17, %v1722_v27 }
 0x2f2   :  { %v820_v10 = vmul.f32 %v816_v25, %v1612_v61  ;;  %v815_v9 = vsel %vm428_vm9, %v812_v16, %v814_v35  ;;  %v818_v18 = vsel %vm428_vm9, %v814_v35, %v808_v4  ;;  %v871_v4 = vld [vmem:[%s1923_s9] sm:$0xff]  ;;  %s1227_s9 = scalar_lea.vmem %s1038_s15, 512 }
 0x2f3   :  { %v821_v19 = vmul.f32 %v815_v9, %v1618_v0  ;;  %v822_v20 = vmul.f32 %v818_v18, %v1622_v1  ;;  %p1228_p4 = scmp.ne.s32.totalorder %s1038_s15, %s1227_s9  ;;  %p1233_p6 = scmp.lt.s32.totalorder %s1227_s9, %s1227_s9 }
 0x2f4   :  { %v824_v21 = vpop.permute.xlu1 %823  ;;  %v1094_v29 = vpack.c.bf16 %v820_v10, %v1724_v32 }
 0x2f5   :  { %v1112_v43 = vpack.c.bf16 %v821_v19, %v1730_v39  ;;  %v826_v15 = vpop.permute.xlu0 %825  ;;  %v1110_v61 = vpack.c.bf16 %v822_v20, %v1732_v40  ;;  %p1234_p7 = por %p1233_p6, %p1232_p5 }
 0x2f6   :  { %1095 = vmatprep.subr.bf16.mxu0 %v1094_v29  ;;  %v833_v1 = vsel %vm466_vm11, %v824_v21, %v826_v15 }
 0x2f7   :  { %1097 = vmatpush1.bf16.msra.mxu0 %v1096_v60  ;;  %1111 = vmatprep.subr.bf16.mxu1 %v1110_v61  ;;  %v835_v38 = vmul.f32 %v833_v1, %v1669_v55  ;;  %p1235_p8 = pnand %p1234_p7, %p1228_p4 }
 0x2f8   :  { %1113 = vmatpush1.bf16.msra.mxu1 %v1112_v43  ;;  %v828_v42 = vpop.permute.xlu1 %827 }
 0x2f9   :  { %v830_v45 = vpop.permute.xlu0 %829  ;;  %v832_v27 = vsel %vm466_vm11, %v826_v15, %v828_v42 }
 0x2fa   :  { %v831_v39 = vsel %vm466_vm11, %v828_v42, %v830_v45  ;;  %v834_v40 = vsel %vm466_vm11, %v830_v45, %v824_v21  ;;  %v836_v47 = vmul.f32 %v832_v27, %v1642_v13 }
 0x2fb   :  { %v837_v31 = vmul.f32 %v831_v39, %v1645_v12  ;;  %v838_v55 = vmul.f32 %v834_v40, %v1652_v22 }
 0x2fc   :  { %v840_v41 = vpop.permute.xlu1 %839 }
 0x2fd   :  { %v842_v0 = vpop.permute.xlu0 %841 }
 0x2fe   :  { %v849_v32 = vsel %vm504_vm10, %v840_v41, %v842_v0 }
 0x2ff   :  { %v851_v44 = vmul.f32 %v849_v32, %v1655_v50 }
 0x300   :  { %v844_v37 = vpop.permute.xlu1 %843 }
 0x301   :  { %v848_v48 = vsel %vm504_vm10, %v842_v0, %v844_v37  ;;  %v846_v36 = vpop.permute.xlu0 %845  ;;  %v1100_v57 = vpack.c.bf16 %v851_v44, %v835_v38 }
 0x302   :  { %v852_v49 = vmul.f32 %v848_v48, %v1660_v52  ;;  %v847_v26 = vsel %vm504_vm10, %v844_v37, %v846_v36  ;;  %v850_v28 = vsel %vm504_vm10, %v846_v36, %v840_v41 }
 0x303   :  { %v853_v50 = vmul.f32 %v847_v26, %v1663_v53  ;;  %v854_v51 = vmul.f32 %v850_v28, %v1666_v54 }
 0x304   :  { %v856_v30 = vpop.permute.xlu1 %855  ;;  %v1098_v56 = vpack.c.bf16 %v852_v49, %v836_v47 }
 0x305   :  { %v1116_v13 = vpack.c.bf16 %v853_v50, %v837_v31  ;;  %v858_v7 = vpop.permute.xlu0 %857  ;;  %v1114_v52 = vpack.c.bf16 %v854_v51, %v838_v55 }
 0x306   :  { %1099 = vmatprep.subr.bf16.mxu0 %v1098_v56  ;;  %v865_v8 = vsel %vm542_vm12, %v856_v30, %v858_v7 }
 0x307   :  { %1101 = vmatpush1.bf16.msra.mxu0 %v1100_v57  ;;  %1115 = vmatprep.subr.bf16.mxu1 %v1114_v52  ;;  %v867_v63 = vmul.f32 %v865_v8, %v1701_v62 }
 0x308   :  { %1117 = vmatpush1.bf16.msra.mxu1 %v1116_v13  ;;  %v860_v12 = vpop.permute.xlu1 %859 }
 0x309   :  { %v864_v22 = vsel %vm542_vm12, %v858_v7, %v860_v12  ;;  %v862_v53 = vpop.permute.xlu0 %861 }
 0x30a   :  { %v868_v54 = vmul.f32 %v864_v22, %v1692_v46  ;;  %v863_v58 = vsel %vm542_vm12, %v860_v12, %v862_v53  ;;  %v866_v59 = vsel %vm542_vm12, %v862_v53, %v856_v30 }
 0x30b   :  { %v869_v2 = vmul.f32 %v863_v58, %v1695_v11  ;;  %v870_v3 = vmul.f32 %v866_v59, %v1698_v14 }
 0x30c   :  { %891 = vmatprep.subr.mxu0 %v868_v54 }
 0x30d   :  { %892 = vmatpush1.msra.mxu0 %v867_v63  ;;  %962 = vmatprep.subr.mxu1 %v870_v3 }
 0x30e   :  { %1052 = vmatmul.mubr.msk.f32.vlgmr.msra.gmra.mrb[0].mxu0 %vm579_vm13, %v871_v4  ;;  %963 = vmatpush1.msra.mxu1 %v869_v2 }
 0x30f   :  { %1053 = vmatmul.mubr.msk.f32.vlgmr.msra.gmra.mrb[0].mxu1 %vm579_vm13, %v871_v4 }
 0x319   :  { %v1021_v24 = vpop.permute.xlu1 %1020 }
 0x3e1   :  { %v941_v46 = vpop.f32.mrb[0].mxu0 }
 0x3e2   :  { %v1023_v62 = vadd.f32 %v1021_v24, %v941_v46  ;;  %v943_v11 = vpop.f32.mrb[1].mxu0  ;;  %v1012_v5 = vpop.f32.mrb[0].mxu1 }
 0x3e3   :  { %v1024_v14 = vadd.f32 %v1021_v24, %v943_v11  ;;  %v1025_v23 = vadd.f32 %v1021_v24, %v1012_v5  ;;  %v1014_v33 = vpop.f32.mrb[1].mxu1 }
 0x3e4   :  { %1027 = vst [vmem:[#allocation10] sm:$0xff] %v1023_v62  ;;  %v1026_v34 = vadd.f32 %v1021_v24, %v1014_v33 }
 0x3e5   :  { %1028 = vst [vmem:[#allocation10 + $0x8] sm:$0xff] %v1024_v14  ;;  %1029 = vst [vmem:[#allocation10 + $0x10] sm:$0xff] %v1025_v23 }
 0x3e6   :  { %1030 = vst [vmem:[#allocation10 + $0x18] sm:$0xff] %v1026_v34 }
 0x3e7   :  { %1238 = shalt.err (!%p1235_p8)
}
 0x3e8   :  { %s1239_s4 = scalar_lea.hbm %s1926_s12, 512 }
 0x3e9   :  { %p1240_p9 = scmp.ne.s32.totalorder %s1926_s12, %s1239_s4  ;;  %p1243_p10 = scmp.lt.u32.totalorder %s1239_s4, %s1926_s12 }
 0x3eb   :  { %p1245_p11 = pnand %p1243_p10, %p1240_p9 }
 0x3ed   :  { %1248 = shalt.err (!%p1245_p11)
}
 0x3ee   :  { %1040 = dma.vmem_to_hbm [thread:$0]  %s1038_s15, 512, %s1926_s12, [#allocation4]  }
 0x3ef   :  { %1255 = dma.done.wait [#allocation4], 512  }
 0x3f0   :  { %1256 = vsyncadd [#allocation4], 4294966784 }
 0x3f1   :  { %1044 = vsyncpa [#allocation3], 1 }
 0x3f2   :  { %1045 = vsyncpa [#allocation6], 1 }
 0x3f3   :  { %1046 = vsyncpa [#allocation9], 1 }
 0x3f4   :  { %1047 = vsyncpa [#allocation4], 1 }

</bundles_post_ra>
